<compile_context>
chip_gen: v7x
topology: tpu7x:2x2x1
jax: 0.10.0
libtpu: 0.0.40
codegen_flags: <defaults>
</compile_context>

<pallas_src>
import functools

import numpy as np
import jax
import jax.numpy as jnp
from jax.experimental import pallas as pl
from jax.experimental.pallas import tpu as pltpu


def _banded_weights(w, W):
    """Fold the kw taps + channels of a 3x3 conv into per-kh banded matrices.

    w: (3, 3, Cin, Cout) HWIO.
    Returns (3, W*Cin, W*Cout); band[kh] @ row implements the kw sum with
    implicit zero padding along W (boundary contributions are zero rows).
    """
    _, _, Cin, Cout = w.shape
    sel = np.zeros((3, W, W), dtype=np.float32)     # sel[kw, w_in, w_out]
    for kw in range(3):
        for wo in range(W):
            wi = wo + kw - 1
            if 0 <= wi < W:
                sel[kw, wi, wo] = 1.0
    sel = jnp.asarray(sel)
    # band[kh, wi*Cin+ci, wo*Cout+co] = sum_kw sel[kw, wi, wo] * w[kh, kw, ci, co]
    band = jnp.einsum('kab,hkio->haibo', sel, w)
    return band.reshape(3, W * Cin, W * Cout)


def _make_fused_convblock_kernel(Nb, H, W, Cin, Cout, neg_slope, compute_dtype):
    WCin = W * Cin
    WCout = W * Cout

    def kernel(x_ref, w1_ref, w2_ref, o_ref, mid_ref):
        # x_ref  : (Nb, H+2, W*Cin)    f32, H-halo-padded, lane-dense input
        # w1_ref : (3, W*Cin, W*Cout)  banded conv1 weights (compute_dtype)
        # w2_ref : (3, W*Cout, W*Cout) banded conv2 weights (compute_dtype)
        # o_ref  : (Nb, H, W*Cout)     lane-dense output tile
        # mid_ref: (Nb, H+2, W*Cout)   f32 VMEM intermediate, H-halo padded

        # ---- conv1: 3 row-shifted matmuls, f32 accumulation --------------------
        acc1 = jnp.zeros((Nb * H, WCout), jnp.float32)
        for kh in range(3):
            lhs = x_ref[:, kh:kh + H, :].reshape(Nb * H, WCin).astype(compute_dtype)
            acc1 = acc1 + jnp.dot(lhs, w1_ref[kh],
                                  preferred_element_type=jnp.float32)
        act1 = jnp.maximum(acc1, neg_slope * acc1)          # LeakyReLU(0.2), f32
        # Dropout2d (eval mode) == identity.

        # ---- intermediate stays resident in VMEM; zero only the 2 halo rows ----
        mid_ref[:, 0:1, :] = jnp.zeros((Nb, 1, WCout), jnp.float32)
        mid_ref[:, H + 1:H + 2, :] = jnp.zeros((Nb, 1, WCout), jnp.float32)
        mid_ref[:, 1:H + 1, :] = act1.reshape(Nb, H, WCout)

        # ---- conv2: same banded trick on the VMEM intermediate -----------------
        acc2 = jnp.zeros((Nb * H, WCout), jnp.float32)
        for kh in range(3):
            lhs = mid_ref[:, kh:kh + H, :].reshape(Nb * H, WCout).astype(compute_dtype)
            acc2 = acc2 + jnp.dot(lhs, w2_ref[kh],
                                  preferred_element_type=jnp.float32)
        act2 = jnp.maximum(acc2, neg_slope * acc2)          # LeakyReLU(0.2), f32
        # Dropout2d (eval mode) == identity.

        # MXU output is already (Nb*H, W*Cout) lane-dense -> unmasked full vst.
        o_ref[...] = act2.reshape(Nb, H, WCout).astype(o_ref.dtype)

    return kernel


@functools.partial(jax.jit, static_argnames=("compute_dtype", "images_per_step"))
def conv_block_forward(x_nchw, w1, w2, drop_prob=0.0,
                       compute_dtype=jnp.bfloat16, images_per_step=1):
    """ConvBlock forward. Input/output NCHW like the PyTorch module.

    w1: (3,3,Cin,Cout) HWIO, w2: (3,3,Cout,Cout) HWIO, bias-free (matches
    nn.Conv2d(..., bias=False) in the spec).
    """
    # TODO(synk): Dropout2d is implemented in eval/inference mode (identity);
    # training-mode stochastic per-channel dropout is not reproduced.
    del drop_prob
    N, Cin, H, W = x_nchw.shape
    Cout = w1.shape[-1]
    Nb = images_per_step
    assert N % Nb == 0, "batch must be divisible by images_per_step"

    # NCHW -> NHWC -> lane-dense (N, H, W*Cin) -> pad only the H halo.
    x = jnp.transpose(x_nchw, (0, 2, 3, 1)).reshape(N, H, W * Cin)
    x_pad = jnp.pad(x, ((0, 0), (1, 1), (0, 0)))

    # Banded weights (built once, constant-folded under jit).
    w1b = _banded_weights(w1, W).astype(compute_dtype)      # (3, W*Cin,  W*Cout)
    w2b = _banded_weights(w2, W).astype(compute_dtype)      # (3, W*Cout, W*Cout)

    kernel = _make_fused_convblock_kernel(Nb, H, W, Cin, Cout, 0.2, compute_dtype)

    out = pl.pallas_call(
        kernel,
        out_shape=jax.ShapeDtypeStruct((N, H, W * Cout), x_nchw.dtype),
        grid_spec=pltpu.PrefetchScalarGridSpec(
            num_scalar_prefetch=0,
            grid=(N // Nb,),
            in_specs=[
                pl.BlockSpec((Nb, H + 2, W * Cin), lambda n: (n, 0, 0)),
                pl.BlockSpec((3, W * Cin, W * Cout), lambda n: (0, 0, 0)),
                pl.BlockSpec((3, W * Cout, W * Cout), lambda n: (0, 0, 0)),
            ],
            out_specs=pl.BlockSpec((Nb, H, W * Cout), lambda n: (n, 0, 0)),
            scratch_shapes=[
                pltpu.VMEM((Nb, H + 2, W * Cout), jnp.float32),  # padded mid act
            ],
        ),
        compiler_params=pltpu.CompilerParams(
            dimension_semantics=("parallel",)),
    )(x_pad, w1b, w2b)

    out = out.reshape(N, H, W, Cout)                        # undo lane-dense
    return jnp.transpose(out, (0, 3, 1, 2))                 # NHWC -> NCHW


def _reference_forward(x_nchw, w1, w2):
    dn = ('NCHW', 'HWIO', 'NCHW')
    y = jax.lax.conv_general_dilated(x_nchw, w1, (1, 1), 'SAME',
                                     dimension_numbers=dn,
                                     precision=jax.lax.Precision.HIGHEST)
    y = jnp.where(y >= 0, y, 0.2 * y)
    y = jax.lax.conv_general_dilated(y, w2, (1, 1), 'SAME',
                                     dimension_numbers=dn,
                                     precision=jax.lax.Precision.HIGHEST)
    y = jnp.where(y >= 0, y, 0.2 * y)
    return y


if __name__ == "__main__":
    key = jax.random.PRNGKey(0)
    kx, k1, k2 = jax.random.split(key, 3)

    N, Cin, Cout, H, W = 2, 4, 8, 16, 16
    drop_prob = 0.0

    x = jax.random.normal(kx, (N, Cin, H, W), dtype=jnp.float32)
    # Deterministic "Conv2d(kernel_size=3, bias=False)" weights in HWIO layout.
    w1 = 0.1 * jax.random.normal(k1, (3, 3, Cin, Cout), dtype=jnp.float32)
    w2 = 0.1 * jax.random.normal(k2, (3, 3, Cout, Cout), dtype=jnp.float32)

    ref = jax.block_until_ready(_reference_forward(x, w1, w2))

    # Exact-ish path: f32 matmul operands.
    out_f32 = jax.block_until_ready(
        conv_block_forward(x, w1, w2, drop_prob, compute_dtype=jnp.float32))
    assert out_f32.shape == (N, Cout, H, W), out_f32.shape
    assert jnp.allclose(out_f32, ref, rtol=2e-3, atol=2e-3), "f32 mismatch vs reference"

    # Perf path: bf16 MXU operands, f32 accumulation.
    out_bf16 = jax.block_until_ready(
        conv_block_forward(x, w1, w2, drop_prob, compute_dtype=jnp.bfloat16))
    assert out_bf16.shape == (N, Cout, H, W), out_bf16.shape
    assert jnp.allclose(out_bf16, ref, rtol=5e-2, atol=5e-2), "bf16 mismatch vs reference"

    print("KERNEL_OK")
</pallas_src>

<mosaic_0001>
module attributes {stable_mosaic.version = 11 : i64} {
  func.func @kernel(%arg0: i32, %arg1: memref<1x18x64xf32, #tpu.memory_space<vmem>>, %arg2: memref<3x64x128xf32, #tpu.memory_space<vmem>>, %arg3: memref<3x128x128xf32, #tpu.memory_space<vmem>>, %arg4: memref<1x16x128xf32, #tpu.memory_space<vmem>>, %arg5: memref<1x18x128xf32, #tpu.memory_space<vmem>>) attributes {dimension_semantics = [#tpu.dimension_semantics<parallel>], iteration_bounds = array<i64: 2>, scalar_prefetch = 0 : i64, scratch_operands = 1 : i64, tpu.core_type = #tpu.core_type<tc>, window_params = [{transform_indices = @transform_0, window_bounds = array<i64: 1, 18, 64>}, {pipeline_mode = #tpu.pipeline_mode<synchronous>, transform_indices = @transform_1, window_bounds = array<i64: 3, 64, 128>}, {pipeline_mode = #tpu.pipeline_mode<synchronous>, transform_indices = @transform_2, window_bounds = array<i64: 3, 128, 128>}, {transform_indices = @transform_3, window_bounds = array<i64: 1, 16, 128>}]} {
    %cst = arith.constant 0.000000e+00 : f32
    %0 = vector.broadcast %cst : f32 to vector<16x128xf32>
    %c0 = arith.constant 0 : index
    %c0_0 = arith.constant 0 : index
    %c0_1 = arith.constant 0 : index
    %1 = vector.load %arg1[%c0, %c0_0, %c0_1] : memref<1x18x64xf32, #tpu.memory_space<vmem>>, vector<1x16x64xf32>
    %2 = vector.shape_cast %1 : vector<1x16x64xf32> to vector<16x64xf32>
    %c0_2 = arith.constant 0 : index
    %c0_3 = arith.constant 0 : index
    %c0_4 = arith.constant 0 : index
    %3 = vector.load %arg2[%c0_2, %c0_3, %c0_4] : memref<3x64x128xf32, #tpu.memory_space<vmem>>, vector<1x64x128xf32>
    %4 = vector.shape_cast %3 : vector<1x64x128xf32> to vector<64x128xf32>
    %cst_5 = arith.constant dense<0.000000e+00> : vector<16x128xf32>
    %5 = tpu.matmul %2, %4, %cst_5 {dimension_numbers = #tpu.dot_dimension_numbers<[1], [0], [0], [1], [0, 0, 1, 1], [], []>} : vector<16x64xf32>, vector<64x128xf32>, vector<16x128xf32> -> vector<16x128xf32>
    %6 = arith.addf %0, %5 : vector<16x128xf32>
    %c0_6 = arith.constant 0 : index
    %c1 = arith.constant 1 : index
    %c0_7 = arith.constant 0 : index
    %7 = vector.load %arg1[%c0_6, %c1, %c0_7] : memref<1x18x64xf32, #tpu.memory_space<vmem>>, vector<1x16x64xf32>
    %8 = vector.shape_cast %7 : vector<1x16x64xf32> to vector<16x64xf32>
    %c1_8 = arith.constant 1 : index
    %c0_9 = arith.constant 0 : index
    %c0_10 = arith.constant 0 : index
    %9 = vector.load %arg2[%c1_8, %c0_9, %c0_10] : memref<3x64x128xf32, #tpu.memory_space<vmem>>, vector<1x64x128xf32>
    %10 = vector.shape_cast %9 : vector<1x64x128xf32> to vector<64x128xf32>
    %cst_11 = arith.constant dense<0.000000e+00> : vector<16x128xf32>
    %11 = tpu.matmul %8, %10, %cst_11 {dimension_numbers = #tpu.dot_dimension_numbers<[1], [0], [0], [1], [0, 0, 1, 1], [], []>} : vector<16x64xf32>, vector<64x128xf32>, vector<16x128xf32> -> vector<16x128xf32>
    %12 = arith.addf %6, %11 : vector<16x128xf32>
    %c0_12 = arith.constant 0 : index
    %c2 = arith.constant 2 : index
    %c0_13 = arith.constant 0 : index
    %13 = vector.load %arg1[%c0_12, %c2, %c0_13] : memref<1x18x64xf32, #tpu.memory_space<vmem>>, vector<1x16x64xf32>
    %14 = vector.shape_cast %13 : vector<1x16x64xf32> to vector<16x64xf32>
    %c2_14 = arith.constant 2 : index
    %c0_15 = arith.constant 0 : index
    %c0_16 = arith.constant 0 : index
    %15 = vector.load %arg2[%c2_14, %c0_15, %c0_16] : memref<3x64x128xf32, #tpu.memory_space<vmem>>, vector<1x64x128xf32>
    %16 = vector.shape_cast %15 : vector<1x64x128xf32> to vector<64x128xf32>
    %cst_17 = arith.constant dense<0.000000e+00> : vector<16x128xf32>
    %17 = tpu.matmul %14, %16, %cst_17 {dimension_numbers = #tpu.dot_dimension_numbers<[1], [0], [0], [1], [0, 0, 1, 1], [], []>} : vector<16x64xf32>, vector<64x128xf32>, vector<16x128xf32> -> vector<16x128xf32>
    %18 = arith.addf %12, %17 : vector<16x128xf32>
    %cst_18 = arith.constant 2.000000e-01 : f32
    %19 = vector.broadcast %cst_18 : f32 to vector<16x128xf32>
    %20 = arith.mulf %19, %18 : vector<16x128xf32>
    %21 = arith.maximumf %18, %20 : vector<16x128xf32>
    %cst_19 = arith.constant 0.000000e+00 : f32
    %22 = vector.broadcast %cst_19 : f32 to vector<1x1x128xf32>
    %c0_20 = arith.constant 0 : index
    %c0_21 = arith.constant 0 : index
    %c0_22 = arith.constant 0 : index
    %23 = vector.load %arg5[%c0_20, %c0_21, %c0_22] : memref<1x18x128xf32, #tpu.memory_space<vmem>>, vector<1x1x128xf32>
    tpu.vector_store %arg5[%c0_20, %c0_21, %c0_22], %22 {strides = array<i32>} : memref<1x18x128xf32, #tpu.memory_space<vmem>>, vector<1x1x128xf32>,
    %cst_23 = arith.constant 0.000000e+00 : f32
    %24 = vector.broadcast %cst_23 : f32 to vector<1x1x128xf32>
    %c0_24 = arith.constant 0 : index
    %c17 = arith.constant 17 : index
    %c0_25 = arith.constant 0 : index
    %25 = vector.load %arg5[%c0_24, %c17, %c0_25] : memref<1x18x128xf32, #tpu.memory_space<vmem>>, vector<1x1x128xf32>
    tpu.vector_store %arg5[%c0_24, %c17, %c0_25], %24 {strides = array<i32>} : memref<1x18x128xf32, #tpu.memory_space<vmem>>, vector<1x1x128xf32>,
    %26 = vector.shape_cast %21 : vector<16x128xf32> to vector<1x16x128xf32>
    %c0_26 = arith.constant 0 : index
    %c1_27 = arith.constant 1 : index
    %c0_28 = arith.constant 0 : index
    %27 = vector.load %arg5[%c0_26, %c1_27, %c0_28] : memref<1x18x128xf32, #tpu.memory_space<vmem>>, vector<1x16x128xf32>
    tpu.vector_store %arg5[%c0_26, %c1_27, %c0_28], %26 {strides = array<i32>} : memref<1x18x128xf32, #tpu.memory_space<vmem>>, vector<1x16x128xf32>,
    %cst_29 = arith.constant 0.000000e+00 : f32
    %28 = vector.broadcast %cst_29 : f32 to vector<16x128xf32>
    %c0_30 = arith.constant 0 : index
    %c0_31 = arith.constant 0 : index
    %c0_32 = arith.constant 0 : index
    %29 = vector.load %arg5[%c0_30, %c0_31, %c0_32] : memref<1x18x128xf32, #tpu.memory_space<vmem>>, vector<1x16x128xf32>
    %30 = vector.shape_cast %29 : vector<1x16x128xf32> to vector<16x128xf32>
    %c0_33 = arith.constant 0 : index
    %c0_34 = arith.constant 0 : index
    %c0_35 = arith.constant 0 : index
    %31 = vector.load %arg3[%c0_33, %c0_34, %c0_35] : memref<3x128x128xf32, #tpu.memory_space<vmem>>, vector<1x128x128xf32>
    %32 = vector.shape_cast %31 : vector<1x128x128xf32> to vector<128x128xf32>
    %cst_36 = arith.constant dense<0.000000e+00> : vector<16x128xf32>
    %33 = tpu.matmul %30, %32, %cst_36 {dimension_numbers = #tpu.dot_dimension_numbers<[1], [0], [0], [1], [0, 0, 1, 1], [], []>} : vector<16x128xf32>, vector<128x128xf32>, vector<16x128xf32> -> vector<16x128xf32>
    %34 = arith.addf %28, %33 : vector<16x128xf32>
    %c0_37 = arith.constant 0 : index
    %c1_38 = arith.constant 1 : index
    %c0_39 = arith.constant 0 : index
    %35 = vector.load %arg5[%c0_37, %c1_38, %c0_39] : memref<1x18x128xf32, #tpu.memory_space<vmem>>, vector<1x16x128xf32>
    %36 = vector.shape_cast %35 : vector<1x16x128xf32> to vector<16x128xf32>
    %c1_40 = arith.constant 1 : index
    %c0_41 = arith.constant 0 : index
    %c0_42 = arith.constant 0 : index
    %37 = vector.load %arg3[%c1_40, %c0_41, %c0_42] : memref<3x128x128xf32, #tpu.memory_space<vmem>>, vector<1x128x128xf32>
    %38 = vector.shape_cast %37 : vector<1x128x128xf32> to vector<128x128xf32>
    %cst_43 = arith.constant dense<0.000000e+00> : vector<16x128xf32>
    %39 = tpu.matmul %36, %38, %cst_43 {dimension_numbers = #tpu.dot_dimension_numbers<[1], [0], [0], [1], [0, 0, 1, 1], [], []>} : vector<16x128xf32>, vector<128x128xf32>, vector<16x128xf32> -> vector<16x128xf32>
    %40 = arith.addf %34, %39 : vector<16x128xf32>
    %c0_44 = arith.constant 0 : index
    %c2_45 = arith.constant 2 : index
    %c0_46 = arith.constant 0 : index
    %41 = vector.load %arg5[%c0_44, %c2_45, %c0_46] : memref<1x18x128xf32, #tpu.memory_space<vmem>>, vector<1x16x128xf32>
    %42 = vector.shape_cast %41 : vector<1x16x128xf32> to vector<16x128xf32>
    %c2_47 = arith.constant 2 : index
    %c0_48 = arith.constant 0 : index
    %c0_49 = arith.constant 0 : index
    %43 = vector.load %arg3[%c2_47, %c0_48, %c0_49] : memref<3x128x128xf32, #tpu.memory_space<vmem>>, vector<1x128x128xf32>
    %44 = vector.shape_cast %43 : vector<1x128x128xf32> to vector<128x128xf32>
    %cst_50 = arith.constant dense<0.000000e+00> : vector<16x128xf32>
    %45 = tpu.matmul %42, %44, %cst_50 {dimension_numbers = #tpu.dot_dimension_numbers<[1], [0], [0], [1], [0, 0, 1, 1], [], []>} : vector<16x128xf32>, vector<128x128xf32>, vector<16x128xf32> -> vector<16x128xf32>
    %46 = arith.addf %40, %45 : vector<16x128xf32>
    %cst_51 = arith.constant 2.000000e-01 : f32
    %47 = vector.broadcast %cst_51 : f32 to vector<16x128xf32>
    %48 = arith.mulf %47, %46 : vector<16x128xf32>
    %49 = arith.maximumf %46, %48 : vector<16x128xf32>
    %50 = vector.shape_cast %49 : vector<16x128xf32> to vector<1x16x128xf32>
    %c0_52 = arith.constant 0 : index
    %c0_53 = arith.constant 0 : index
    %c0_54 = arith.constant 0 : index
    %51 = vector.load %arg4[%c0_52, %c0_53, %c0_54] : memref<1x16x128xf32, #tpu.memory_space<vmem>>, vector<1x16x128xf32>
    tpu.vector_store %arg4[%c0_52, %c0_53, %c0_54], %50 {strides = array<i32>} : memref<1x16x128xf32, #tpu.memory_space<vmem>>, vector<1x16x128xf32>,
    return
  }
  func.func @transform_0(%arg0: i32) -> (i32, i32, i32) {
    %c0_i32 = arith.constant 0 : i32
    %c0_i32_0 = arith.constant 0 : i32
    %c0_i32_1 = arith.constant 0 : i32
    return %arg0, %c0_i32, %c0_i32_0 : i32, i32, i32
  }
  func.func @transform_1(%arg0: i32) -> (i32, i32, i32) {
    %c0_i32 = arith.constant 0 : i32
    %c0_i32_0 = arith.constant 0 : i32
    %c0_i32_1 = arith.constant 0 : i32
    %c0_i32_2 = arith.constant 0 : i32
    return %c0_i32, %c0_i32_0, %c0_i32_1 : i32, i32, i32
  }
  func.func @transform_2(%arg0: i32) -> (i32, i32, i32) {
    %c0_i32 = arith.constant 0 : i32
    %c0_i32_0 = arith.constant 0 : i32
    %c0_i32_1 = arith.constant 0 : i32
    %c0_i32_2 = arith.constant 0 : i32
    return %c0_i32, %c0_i32_0, %c0_i32_1 : i32, i32, i32
  }
  func.func @transform_3(%arg0: i32) -> (i32, i32, i32) {
    %c0_i32 = arith.constant 0 : i32
    %c0_i32_0 = arith.constant 0 : i32
    %c0_i32_1 = arith.constant 0 : i32
    return %arg0, %c0_i32, %c0_i32_0 : i32, i32, i32
  }
}

</mosaic_0001>

<bundles_post_ra>
// kernel: conv_block_forward.1
= control target key start
LH: loop header
LB: loop body
LE: loop exit
PB: predicated region body
PF: predicated region fallthrough
CT: control target
= control target key end

     0   :  { %s1303_s12 = smov 0   ;;  %s1554_s0 = inlined_call_operand.vmem [shape: f32[2,18,64], index: 0, kind: input, shape index: {}]   ;;  %s1555_s1 = inlined_call_operand.vmem [shape: f32[3,64,128], index: 1, kind: input, shape index: {}]   ;;  %s1556_s2 = inlined_call_operand.vmem [shape: f32[3,128,128], index: 2, kind: input, shape index: {}]   ;;  %s1557_s3 = inlined_call_operand.vmem [shape: f32[2,16,128], index: 3, kind: output, shape index: {}]  }
   0x1 LB: > { %s801_s13 = sadd.s32 4294967295, %s1280_s12   ;;  %p805_p0 = scmp.ge.s32.totalorder %s1280_s12, 1  ;;  %s1280_s12 = sphi %s1303_s12, %s13_s12  }
   0x2   : > { %p137_p1 = scmp.lt.s32.totalorder %s1280_s12, 3 }
   0x4   : > { %p138_p2 = pnand %p805_p0, %p137_p1 }
   0x5   : > { %v809_v0 = vld [vmem:[%s1555_s1 + $0x40] sm:$0xff] (!%p138_p2)  ;;  %v810_v1 = vld [vmem:[%s1555_s1 + $0x48] sm:$0xff] (!%p138_p2)  ;;  %v811_v2 = vld [vmem:[%s1555_s1 + $0x50] sm:$0xff] (!%p138_p2)  ;;  %p161_p3 = scmp.lt.s32.totalorder (!%p138_p2), %s801_s13, 1  ;;  %vm192_vm0 = vcmask (!%p138_p2), 523264  }
   0x6   : > { %141 = sbr.rel (%p138_p2) target bundleno = 534 (0x216), region = 32  ;;  %v1112_v3 = vpack.c.bf16 (!%p138_p2), %v810_v1, %v809_v0  ;;  %v812_v4 = vld [vmem:[%s1555_s1 + $0x58] sm:$0xff] (!%p138_p2)  ;;  %v813_v6 = vld [vmem:[%s1555_s1 + $0x60] sm:$0xff] (!%p138_p2)  ;;  %v814_v7 = vld [vmem:[%s1555_s1 + $0x68] sm:$0xff] (!%p138_p2) }
   0x7   : > { %v1116_v5 = vpack.c.bf16 (!%p138_p2), %v812_v4, %v811_v2  ;;  %v1120_v8 = vpack.c.bf16 (!%p138_p2), %v814_v7, %v813_v6  ;;  %v815_v9 = vld [vmem:[%s1555_s1 + $0x70] sm:$0xff] (!%p138_p2)  ;;  %v816_v10 = vld [vmem:[%s1555_s1 + $0x78] sm:$0xff] (!%p138_p2)  ;;  %v173_v13 = vld [vmem:[%s1555_s1] sm:$0xff] (!%p138_p2) }
   0x8   : > { %1113 = vmatprep.subr.bf16.mxu0 (!%p138_p2), %v1112_v3  ;;  %v1124_v12 = vpack.c.bf16 (!%p138_p2), %v816_v10, %v815_v9  ;;  %v174_v14 = vld [vmem:[%s1555_s1 + $0x8] sm:$0xff] (!%p138_p2)  ;;  %v459_v15 = vld [vmem:[%s1556_s2] sm:$0xff] (!%p138_p2)  ;;  %v461_v18 = vld [vmem:[%s1556_s2 + $0x10] sm:$0xff] (!%p138_p2) }
   0x9   : > { %1115 = vmatpush3.bf16.msra.mxu0 (!%p138_p2), %v1112_v3  ;;  %v460_v16 = vld [vmem:[%s1556_s2 + $0x8] sm:$0xff] (!%p138_p2)  ;;  %v462_v19 = vld [vmem:[%s1556_s2 + $0x18] sm:$0xff] (!%p138_p2)  ;;  %v463_v21 = vld [vmem:[%s1556_s2 + $0x20] sm:$0xff] (!%p138_p2)  ;;  %v1128_v22 = vpack.c.bf16 (!%p138_p2), %v174_v14, %v173_v13 }
   0xa   : > { %1117 = vmatprep.subr.bf16.mxu0 (!%p138_p2), %v1116_v5  ;;  %v1192_v17 = vpack.c.bf16 (!%p138_p2), %v460_v16, %v459_v15  ;;  %v1196_v20 = vpack.c.bf16 (!%p138_p2), %v462_v19, %v461_v18  ;;  %v464_v23 = vld [vmem:[%s1556_s2 + $0x28] sm:$0xff] (!%p138_p2)  ;;  %v175_v24 = vld [vmem:[%s1555_s1 + $0x10] sm:$0xff] (!%p138_p2)  ;;  %v176_v25 = vld [vmem:[%s1555_s1 + $0x18] sm:$0xff] (!%p138_p2) }
   0xb   : > { %v1200_v26 = vpack.c.bf16 (!%p138_p2), %v464_v23, %v463_v21  ;;  %v465_v28 = vld [vmem:[%s1556_s2 + $0x30] sm:$0xff] (!%p138_p2)  ;;  %v466_v29 = vld [vmem:[%s1556_s2 + $0x38] sm:$0xff] (!%p138_p2)  ;;  %v1132_v30 = vpack.c.bf16 (!%p138_p2), %v176_v25, %v175_v24  ;;  %v177_v32 = vld [vmem:[%s1555_s1 + $0x20] sm:$0xff] (!%p138_p2)  ;;  %v1282_v23 = vmov (!%p138_p2), 0.0  }
   0xc   : > { %1193 = vmatprep.subr.bf16.mxu1 (!%p138_p2), %v1192_v17  ;;  %v178_v33 = vld [vmem:[%s1555_s1 + $0x28] sm:$0xff] (!%p138_p2)  ;;  %v1204_v34 = vpack.c.bf16 (!%p138_p2), %v466_v29, %v465_v28  ;;  %v467_v35 = vld [vmem:[%s1556_s2 + $0x40] sm:$0xff] (!%p138_p2)  ;;  %v179_v38 = vld [vmem:[%s1555_s1 + $0x30] sm:$0xff] (!%p138_p2)  ;;  %453 = vst [vmem:[#allocation2] sm:$0x1] (!%p138_p2), %v1282_v23 }
   0xd   : > { %s1559_s13 = smov (!%p161_p3, %s801_s13), 1  ;;  %1119 = vmatpush3.bf16.msra.mxu0 %v1116_v5  ;;  %1195 = vmatpush3.bf16.msra.mxu1 %v1192_v17  ;;  %v468_v36 = vld [vmem:[%s1556_s2 + $0x48] sm:$0xff]  ;;  %v1136_v37 = vpack.c.bf16 %v178_v33, %v177_v32  ;;  %v180_v39 = vld [vmem:[%s1555_s1 + $0x38] sm:$0xff]  ;;  %v821_v42 = vld [vmem:[%s1555_s1 + $0x80] sm:$0xff]  ;;  %454 = vst [vmem:[#allocation2 + $0x11] sm:$0x1] %v1282_v23 }
   0xe   : > { %s1264_s26 = smul.u32 24, %s1559_s13  ;;  %1121 = vmatprep.subr.bf16.mxu0 %v1120_v8  ;;  %1197 = vmatprep.subr.bf16.mxu1 %v1196_v20  ;;  %v1208_v40 = vpack.c.bf16 %v468_v36, %v467_v35  ;;  %v1140_v41 = vpack.c.bf16 %v180_v39, %v179_v38  ;;  %v822_v43 = vld [vmem:[%s1555_s1 + $0x88] sm:$0xff]  ;;  %v823_v45 = vld [vmem:[%s1555_s1 + $0x90] sm:$0xff]  ;;  %v824_v46 = vld [vmem:[%s1555_s1 + $0x98] sm:$0xff]  ;;  %s865_s14 = sshll.u32 %s1559_s13, 4 }
   0xf   : > { %v1144_v44 = vpack.c.bf16 %v822_v43, %v821_v42  ;;  %v1148_v48 = vpack.c.bf16 %v824_v46, %v823_v45  ;;  %v825_v50 = vld [vmem:[%s1555_s1 + $0xa0] sm:$0xff]  ;;  %v826_v51 = vld [vmem:[%s1555_s1 + $0xa8] sm:$0xff]  ;;  %v827_v53 = vld [vmem:[%s1555_s1 + $0xb0] sm:$0xff]  ;;  %s170_s17 = scalar_lea.vmem %s1557_s3, %s865_s14 }
  0x10   : > { %s1341_s6 = scalar_lea.vmem %s1554_s0, %s1264_s26  ;;  %v1152_v52 = vpack.c.bf16 %v826_v51, %v825_v50  ;;  %v828_v54 = vld [vmem:[%s1555_s1 + $0xb8] sm:$0xff]  ;;  %v831_v56 = vld [vmem:[%s1556_s2 + $0x80] sm:$0xff]  ;;  %v832_v57 = vld [vmem:[%s1556_s2 + $0x88] sm:$0xff] }
  0x11   : > { %v181_v11 = vld [vmem:[%s1341_s6 + $0x1] sm:$0xff]  ;;  %1123 = vmatpush3.bf16.msra.mxu0 %v1120_v8  ;;  %v182_v27 = vld [vmem:[%s1341_s6 + $0x9] sm:$0xff]  ;;  %1199 = vmatpush3.bf16.msra.mxu1 %v1196_v20  ;;  %v1156_v55 = vpack.c.bf16 %v828_v54, %v827_v53  ;;  %v1160_v58 = vpack.c.bf16 %v832_v57, %v831_v56  ;;  %v834_v60 = vld [vmem:[%s1556_s2 + $0x98] sm:$0xff] }
  0x12   : > { %966 = vmatprep.mubr.msk.f32.mxu0 %vm192_vm0, %v181_v11  ;;  %1125 = vmatprep.subr.bf16.mxu0 %v1124_v12  ;;  %v171_v31 = vld [vmem:[%s1341_s6] sm:$0xff]  ;;  %v172_v47 = vld [vmem:[%s1341_s6 + $0x8] sm:$0xff]  ;;  %v833_v59 = vld [vmem:[%s1556_s2 + $0x90] sm:$0xff] }
  0x13   : > { %1201 = vmatprep.subr.bf16.mxu1 %v1200_v26  ;;  %v355_v49 = vld [vmem:[%s1341_s6 + $0x2] sm:$0xff]  ;;  %v356_v61 = vld [vmem:[%s1341_s6 + $0xa] sm:$0xff]  ;;  %v1164_v62 = vpack.c.bf16 %v834_v60, %v833_v59  ;;  %v838_v3 = vld [vmem:[%s1556_s2 + $0xb8] sm:$0xff] }
  0x14   : > { %v835_v63 = vld [vmem:[%s1556_s2 + $0xa0] sm:$0xff]  ;;  %v836_v0 = vld [vmem:[%s1556_s2 + $0xa8] sm:$0xff]  ;;  %v837_v2 = vld [vmem:[%s1556_s2 + $0xb0] sm:$0xff] }
  0x15   : > { %1127 = vmatpush3.bf16.msra.mxu0 %v1124_v12  ;;  %1203 = vmatpush3.bf16.msra.mxu1 %v1200_v26  ;;  %v1168_v1 = vpack.c.bf16 %v836_v0, %v835_v63  ;;  %v1172_v4 = vpack.c.bf16 %v838_v3, %v837_v2  ;;  %v839_v5 = vld [vmem:[%s1556_s2 + $0xc0] sm:$0xff]  ;;  %v840_v6 = vld [vmem:[%s1556_s2 + $0xc8] sm:$0xff]  ;;  %v841_v8 = vld [vmem:[%s1556_s2 + $0xd0] sm:$0xff] }
  0x16   : > { %1129 = vmatprep.subr.bf16.mxu0 %v1128_v22  ;;  %1205 = vmatprep.subr.bf16.mxu1 %v1204_v34  ;;  %v1176_v7 = vpack.c.bf16 %v840_v6, %v839_v5  ;;  %v842_v9 = vld [vmem:[%s1556_s2 + $0xd8] sm:$0xff]  ;;  %v843_v11 = vld [vmem:[%s1556_s2 + $0xe0] sm:$0xff]  ;;  %v844_v12 = vld [vmem:[%s1556_s2 + $0xe8] sm:$0xff] }
  0x17   : > { %v1180_v10 = vpack.c.bf16 %v842_v9, %v841_v8  ;;  %v1184_v13 = vpack.c.bf16 %v844_v12, %v843_v11  ;;  %v469_v14 = vld [vmem:[%s1556_s2 + $0x50] sm:$0xff]  ;;  %v470_v15 = vld [vmem:[%s1556_s2 + $0x58] sm:$0xff]  ;;  %v471_v20 = vld [vmem:[%s1556_s2 + $0x60] sm:$0xff] }
  0x18   : > { %967 = vmatmul.mubr.msk.f32.vlgmr.msra.gmra.mrb[0].mxu0 %vm192_vm0, %v182_v27  ;;  %v1212_v16 = vpack.c.bf16 %v470_v15, %v469_v14  ;;  %v845_v17 = vld [vmem:[%s1556_s2 + $0xf0] sm:$0xff]  ;;  %v846_v18 = vld [vmem:[%s1556_s2 + $0xf8] sm:$0xff]  ;;  %v472_v21 = vld [vmem:[%s1556_s2 + $0x68] sm:$0xff] }
  0x19   : > { %1131 = vmatpush3.bf16.msra.mxu0 %v1128_v22  ;;  %985 = vmatprep.mubr.msk.f32.mxu0 %vm192_vm0, %v171_v31  ;;  %v1188_v19 = vpack.c.bf16 %v846_v18, %v845_v17  ;;  %v1216_v22 = vpack.c.bf16 %v472_v21, %v471_v20  ;;  %v473_v24 = vld [vmem:[%s1556_s2 + $0x70] sm:$0xff]  ;;  %v474_v25 = vld [vmem:[%s1556_s2 + $0x78] sm:$0xff]  ;;  %v847_v27 = vld [vmem:[%s1556_s2 + $0x100] sm:$0xff] }
  0x1a   : > { %1133 = vmatprep.subr.bf16.mxu0 %v1132_v30  ;;  %1207 = vmatpush3.bf16.msra.mxu1 %v1204_v34  ;;  %v1220_v26 = vpack.c.bf16 %v474_v25, %v473_v24  ;;  %v848_v28 = vld [vmem:[%s1556_s2 + $0x108] sm:$0xff]  ;;  %v849_v36 = vld [vmem:[%s1556_s2 + $0x110] sm:$0xff]  ;;  %v854_v46 = vld [vmem:[%s1556_s2 + $0x138] sm:$0xff] }
  0x1b   : > { %1209 = vmatprep.subr.bf16.mxu1 %v1208_v40  ;;  %v1224_v29 = vpack.c.bf16 %v848_v28, %v847_v27  ;;  %v852_v42 = vld [vmem:[%s1556_s2 + $0x128] sm:$0xff]  ;;  %v853_v45 = vld [vmem:[%s1556_s2 + $0x130] sm:$0xff]  ;;  %v859_v54 = vld [vmem:[%s1556_s2 + $0x160] sm:$0xff] }
  0x1c   : > { %v857_v51 = vld [vmem:[%s1556_s2 + $0x150] sm:$0xff] }
  0x1d   : > { %1135 = vmatpush3.bf16.msra.mxu0 %v1132_v30  ;;  %v861_v57 = vld [vmem:[%s1556_s2 + $0x170] sm:$0xff] }
  0x1e   : > { %1137 = vmatprep.subr.bf16.mxu0 %v1136_v37  ;;  %1211 = vmatpush3.bf16.msra.mxu1 %v1208_v40 }
  0x1f   : > { %1213 = vmatprep.subr.bf16.mxu1 %v1212_v16 }
  0x21   : > { %1139 = vmatpush3.bf16.msra.mxu0 %v1136_v37  ;;  %v850_v37 = vld [vmem:[%s1556_s2 + $0x118] sm:$0xff] }
  0x22   : > { %1141 = vmatprep.subr.bf16.mxu0 %v1140_v41  ;;  %1215 = vmatpush3.bf16.msra.mxu1 %v1212_v16  ;;  %v1228_v40 = vpack.c.bf16 %v850_v37, %v849_v36 }
  0x23   : > { %1217 = vmatprep.subr.bf16.mxu1 %v1216_v22 }
  0x25   : > { %1143 = vmatpush3.bf16.msra.mxu0 %v1140_v41  ;;  %v851_v41 = vld [vmem:[%s1556_s2 + $0x120] sm:$0xff] }
  0x26   : > { %1145 = vmatprep.subr.bf16.mxu0 %v1144_v44  ;;  %1219 = vmatpush3.bf16.msra.mxu1 %v1216_v22 }
  0x27   : > { %1221 = vmatprep.subr.bf16.mxu1 %v1220_v26 }
  0x28   : > { %986 = vmatmul.mubr.msk.f32.vlgmr.msra.gmra.mrb[0].mxu0 %vm192_vm0, %v172_v47  ;;  %v1236_v47 = vpack.c.bf16 %v854_v46, %v853_v45 }
  0x29   : > { %1147 = vmatpush3.bf16.msra.mxu0 %v1144_v44  ;;  %1004 = vmatprep.mubr.msk.f32.mxu0 %vm192_vm0, %v355_v49  ;;  %v1232_v44 = vpack.c.bf16 %v852_v42, %v851_v41  ;;  %v856_v49 = vld [vmem:[%s1556_s2 + $0x148] sm:$0xff] }
  0x2a   : > { %1149 = vmatprep.subr.bf16.mxu0 %v1148_v48  ;;  %1223 = vmatpush3.bf16.msra.mxu1 %v1220_v26 }
  0x2b   : > { %1225 = vmatprep.subr.bf16.mxu1 %v1224_v29 }
  0x2d   : > { %1151 = vmatpush3.bf16.msra.mxu0 %v1148_v48  ;;  %v855_v48 = vld [vmem:[%s1556_s2 + $0x140] sm:$0xff] }
  0x2e   : > { %1153 = vmatprep.subr.bf16.mxu0 %v1152_v52  ;;  %v1240_v50 = vpack.c.bf16 %v856_v49, %v855_v48 }
  0x31   : > { %1155 = vmatpush3.bf16.msra.mxu0 %v1152_v52  ;;  %v858_v52 = vld [vmem:[%s1556_s2 + $0x158] sm:$0xff] }
  0x32   : > { %1157 = vmatprep.subr.bf16.mxu0 %v1156_v55  ;;  %v1244_v53 = vpack.c.bf16 %v858_v52, %v857_v51 }
  0x35   : > { %1159 = vmatpush3.bf16.msra.mxu0 %v1156_v55  ;;  %v860_v55 = vld [vmem:[%s1556_s2 + $0x168] sm:$0xff] }
  0x36   : > { %1161 = vmatprep.subr.bf16.mxu0 %v1160_v58  ;;  %v1248_v56 = vpack.c.bf16 %v860_v55, %v859_v54 }
  0x38   : > { %1005 = vmatmul.mubr.msk.f32.vlgmr.msra.gmra.mrb[0].mxu0 %vm192_vm0, %v356_v61 }
  0x39   : > { %1163 = vmatpush3.bf16.msra.mxu0 %v1160_v58  ;;  %v862_v58 = vld [vmem:[%s1556_s2 + $0x178] sm:$0xff] }
  0x3a   : > { %1165 = vmatprep.subr.bf16.mxu0 %v1164_v62  ;;  %v1252_v59 = vpack.c.bf16 %v862_v58, %v861_v57 }
  0x3d   : > { %1167 = vmatpush3.bf16.msra.mxu0 %v1164_v62 }
  0x3e   : > { %1169 = vmatprep.subr.bf16.mxu0 %v1168_v1 }
  0x41   : > { %1171 = vmatpush3.bf16.msra.mxu0 %v1168_v1 }
  0x42   : > { %1173 = vmatprep.subr.bf16.mxu0 %v1172_v4 }
  0x45   : > { %1175 = vmatpush3.bf16.msra.mxu0 %v1172_v4 }
  0x46   : > { %1177 = vmatprep.subr.bf16.mxu0 %v1176_v7 }
  0x49   : > { %1179 = vmatpush3.bf16.msra.mxu0 %v1176_v7 }
  0x4a   : > { %1181 = vmatprep.subr.bf16.mxu0 %v1180_v10 }
  0x4d   : > { %1183 = vmatpush3.bf16.msra.mxu0 %v1180_v10 }
  0x4e   : > { %1185 = vmatprep.subr.bf16.mxu0 %v1184_v13 }
  0x51   : > { %1187 = vmatpush3.bf16.msra.mxu0 %v1184_v13 }
  0x52   : > { %1189 = vmatprep.subr.bf16.mxu0 %v1188_v19 }
  0x55   : > { %1191 = vmatpush3.bf16.msra.mxu0 %v1188_v19 }
 0x10b   : > { %v1006_v30 = vpop.f32.mrb[0].mxu0 }
 0x10c   : > { %v450_v31 = vmul.f32 0.2, %v1006_v30  ;;  %v438_v32 = vpop.f32.mrb[1].mxu0 }
 0x10d   : > { %v449_v33 = vmul.f32 0.2, %v438_v32 }
 0x10e   : > { %v452_v34 = vmax.f32 %v1006_v30, %v450_v31 }
 0x10f   : > { %v451_v35 = vmax.f32 %v438_v32, %v449_v33 }
 0x110   : > { %456 = vst [vmem:[#allocation2 + $0x9] sm:$0xff] %v452_v34 }
 0x111   : > { %455 = vst [vmem:[#allocation2 + $0x1] sm:$0xff] %v451_v35  ;;  %1039 = vmatprep.mubr.f32.mxu0 %v451_v35 }
 0x112   : > { %1040 = vmatmul.mubr.f32.vlgmr.msra.gmra.mrb[2].mxu0 %v452_v34 }
 0x117   : > { %v645_v60 = vld [vmem:[#allocation2 + $0xa] sm:$0xff] }
 0x118   : > { %v457_v38 = vld [vmem:[#allocation2] sm:$0xff]  ;;  %v458_v39 = vld [vmem:[#allocation2 + $0x8] sm:$0xff] }
 0x119   : > { %1074 = vmatprep.mubr.f32.mxu1 %v457_v38  ;;  %v644_v43 = vld [vmem:[#allocation2 + $0x2] sm:$0xff] }
 0x11a   : > { %1075 = vmatmul.mubr.f32.vlgmr.msra.gmra.mrb[0].mxu1 %v458_v39 }
 0x11b   : > { %1227 = vmatpush3.bf16.msra.mxu1 %v1224_v29  ;;  %1109 = vmatprep.mubr.f32.mxu1 %v644_v43 }
 0x11c   : > { %1229 = vmatprep.subr.bf16.mxu1 %v1228_v40 }
 0x11f   : > { %1231 = vmatpush3.bf16.msra.mxu1 %v1228_v40 }
 0x120   : > { %1233 = vmatprep.subr.bf16.mxu1 %v1232_v44 }
 0x123   : > { %1235 = vmatpush3.bf16.msra.mxu1 %v1232_v44 }
 0x124   : > { %1237 = vmatprep.subr.bf16.mxu1 %v1236_v47 }
 0x127   : > { %1239 = vmatpush3.bf16.msra.mxu1 %v1236_v47 }
 0x128   : > { %1241 = vmatprep.subr.bf16.mxu1 %v1240_v50 }
 0x12b   : > { %1243 = vmatpush3.bf16.msra.mxu1 %v1240_v50 }
 0x12c   : > { %1245 = vmatprep.subr.bf16.mxu1 %v1244_v53 }
 0x12f   : > { %1247 = vmatpush3.bf16.msra.mxu1 %v1244_v53 }
 0x130   : > { %1249 = vmatprep.subr.bf16.mxu1 %v1248_v56 }
 0x133   : > { %1251 = vmatpush3.bf16.msra.mxu1 %v1248_v56 }
 0x134   : > { %1253 = vmatprep.subr.bf16.mxu1 %v1252_v59 }
 0x137   : > { %1255 = vmatpush3.bf16.msra.mxu1 %v1252_v59 }
 0x13a   : > { %1110 = vmatmul.mubr.f32.vlgmr.msra.gmra.mrb[0].mxu1 %v645_v60 }
 0x1e5   : > { %v1041_v61 = vpop.f32.mrb[2].mxu0 }
 0x1e6   : > { %v560_v62 = vpop.f32.mrb[3].mxu0 }
 0x20d   : > { %v1111_v63 = vpop.f32.mrb[0].mxu1 }
 0x20e   : > { %v1256_v0 = vadd.f32 %v1111_v63, %v1041_v61  ;;  %v729_v1 = vpop.f32.mrb[1].mxu1 }
 0x20f   : > { %v1257_v2 = vadd.f32 %v729_v1, %v560_v62 }
 0x210   : > { %v741_v3 = vmul.f32 0.2, %v1256_v0 }
 0x211   : > { %v740_v4 = vmul.f32 0.2, %v1257_v2 }
 0x212   : > { %v743_v5 = vmax.f32 %v1256_v0, %v741_v3 }
 0x213   : > { %v742_v6 = vmax.f32 %v1257_v2, %v740_v4 }
 0x214   : > { %745 = vst [vmem:[%s170_s17 + $0x8] sm:$0xff] %v743_v5 }
 0x215   : > { %744 = vst [vmem:[%s170_s17] sm:$0xff] %v742_v6 }
 0x216 PF: > { %s13_s12 = sadd.s32 1, %s1280_s12  }
 0x217   : > { %p10_p4 = scmp.ge.s32.totalorder %s13_s12, 4  }
 0x219   :  { %12 = sbr.rel (!%p10_p4) target bundleno = 1 (0x1), region = 66 }

</bundles_post_ra>
